<compile_context>
chip_gen: v6e
topology: v6e:2x2x1
jax: 0.10.0
libtpu: 0.0.40
codegen_flags: <defaults>
</compile_context>

<pallas_src>
import functools
import math

import jax
import jax.numpy as jnp
import numpy as np
from jax.experimental import pallas as pl
from jax.experimental.pallas import tpu as pltpu


def _layernorm(x, gamma, beta, eps=1e-5):
    # x: [R, C], gamma/beta: [1, C]  (biased variance, like torch.nn.LayerNorm)
    mu = jnp.mean(x, axis=-1, keepdims=True)
    var = jnp.mean((x - mu) ** 2, axis=-1, keepdims=True)
    return (x - mu) * jax.lax.rsqrt(var + eps) * gamma + beta


def block_kernel(x_ref, wqkv_ref, wfc1_ref, wfc2_ref, vec_ref,
                 o_ref, y_ref, *, n_head, batch, seq):
    x = x_ref[...]                             # [B*T, C] float32 (whole batch, flattened)
    BT, C = x.shape
    hd = C // n_head
    H4 = 4 * C

    # Packed small-parameter table: rows are (bqkv | bfc1 | bfc2 | g1 | b1 | g2 | b2).
    vec = vec_ref[...]                         # [8, 4C] float32
    bqkv = vec[0:1, :3 * C]
    bfc1 = vec[1:2, :H4]
    bfc2 = vec[2:3, :C]
    g1, beta1 = vec[3:4, :C], vec[4:5, :C]
    g2, beta2 = vec[5:6, :C], vec[6:7, :C]

    # ---- QKV projection: one lane-dense bf16 MXU matmul, f32 accumulation ----
    # (1/sqrt(hd) attention scale is already folded into the Q columns of W/b)
    x_bf = x.astype(jnp.bfloat16)
    qkv = jnp.dot(x_bf, wqkv_ref[...], preferred_element_type=jnp.float32) + bqkv
    qkv_bf = qkv.astype(jnp.bfloat16)          # single cast, sliced per head below

    # ---- Multi-head self-attention (no output projection, matching the module) ----
    # Per-head outputs are written in f32 to the VMEM scratch at static column slices.
    dn = (((1,), (1,)), ((), ()))              # contract last dims: q @ k^T, no transpose
    for b in range(batch):                     # static loops (B=2, n_head=4)
        r0 = b * seq
        for h in range(n_head):
            q_h = qkv_bf[r0:r0 + seq, h * hd:(h + 1) * hd]                  # [T, hd]
            k_h = qkv_bf[r0:r0 + seq, C + h * hd:C + (h + 1) * hd]          # [T, hd]
            v_h = qkv_bf[r0:r0 + seq, 2 * C + h * hd:2 * C + (h + 1) * hd]  # [T, hd]

            s = jax.lax.dot_general(q_h, k_h, dn,
                                    preferred_element_type=jnp.float32)     # [T, T]
            s = s - jnp.max(s, axis=-1, keepdims=True)
            p = jnp.exp(s)
            p = p * pl.reciprocal(jnp.sum(p, axis=-1, keepdims=True), approx=True)

            y_h = jnp.dot(p.astype(jnp.bfloat16), v_h,
                          preferred_element_type=jnp.float32)               # [T, hd] f32
            y_ref[pl.ds(r0, seq), pl.ds(h * hd, hd)] = y_h

    y = y_ref[...]                             # [B*T, C] f32 attention output

    # ---- residual + LayerNorm 1 (f32) ----
    x1 = _layernorm(x + y, g1, beta1)

    # ---- MLP: fc1 -> exact (erf) GELU -> fc2, bf16 matmul inputs, f32 accumulate ----
    h1 = jnp.dot(x1.astype(jnp.bfloat16), wfc1_ref[...],
                 preferred_element_type=jnp.float32) + bfc1
    h1 = 0.5 * h1 * (1.0 + jax.lax.erf(h1 * (1.0 / math.sqrt(2.0))))
    m = jnp.dot(h1.astype(jnp.bfloat16), wfc2_ref[...],
                preferred_element_type=jnp.float32) + bfc2

    # ---- residual + LayerNorm 2 (f32) ----
    x2 = _layernorm(x1 + m, g2, beta2)

    o_ref[...] = x2.astype(o_ref.dtype)


def prepare_block_params(params, n_head):
    """One-time (init-time) parameter prep: Q-scale fold, bf16 casts, vector packing."""
    (wqkv, bqkv, g1, beta1, wfc1, bfc1, wfc2, bfc2, g2, beta2) = params
    C = wqkv.shape[0]
    hd = C // n_head
    H4 = 4 * C

    scale = 1.0 / math.sqrt(hd)
    col_scale = jnp.concatenate([jnp.full((C,), scale, jnp.float32),
                                 jnp.ones((2 * C,), jnp.float32)])
    wqkv_s = (wqkv * col_scale[None, :]).astype(jnp.bfloat16)   # scale folded into W_q
    bqkv_s = bqkv * col_scale[None, :]                          # and into b_q (kept f32)

    wfc1_bf = wfc1.astype(jnp.bfloat16)
    wfc2_bf = wfc2.astype(jnp.bfloat16)

    # Pack all small f32 vectors into one [8, 4C] table (single DMA'd input).
    vec = jnp.zeros((8, H4), jnp.float32)
    vec = vec.at[0, :3 * C].set(bqkv_s[0])
    vec = vec.at[1, :H4].set(bfc1[0])
    vec = vec.at[2, :C].set(bfc2[0])
    vec = vec.at[3, :C].set(g1[0])
    vec = vec.at[4, :C].set(beta1[0])
    vec = vec.at[5, :C].set(g2[0])
    vec = vec.at[6, :C].set(beta2[0])

    return wqkv_s, wfc1_bf, wfc2_bf, vec


def block_forward(x, prepared, n_head):
    wqkv_s, wfc1_bf, wfc2_bf, vec = prepared
    B, T, C = x.shape
    H4 = 4 * C
    BT = B * T

    x2d = x.reshape(BT, C)                     # fold batch: one grid step for all rows
    kernel = functools.partial(block_kernel, n_head=n_head, batch=B, seq=T)
    full = lambda shape: pl.BlockSpec(shape, lambda i: (0,) * len(shape))

    # advisory cost estimate: qkv + attention (qk^T + pv) + fc1 + fc2
    flops = int(2 * B * T * C * (11 * C + 2 * T))
    transcendentals = int(B * (n_head * T * T + T * H4))        # exp + erf
    bytes_accessed = int(
        2 * BT * C * 4                                          # x in + out (f32)
        + (wqkv_s.size + wfc1_bf.size + wfc2_bf.size) * 2       # bf16 weights
        + vec.size * 4)                                         # packed f32 vectors

    out = pl.pallas_call(
        kernel,
        out_shape=jax.ShapeDtypeStruct((BT, C), x.dtype),
        grid=(1,),                             # single step; NOTE: on dual-TC v7x a
                                               # 2-wide "parallel" batch axis could be
                                               # used instead to shard rows across cores
        in_specs=[
            full((BT, C)),                     # x (whole flattened batch)
            full((C, 3 * C)),                  # W_qkv (bf16, q-scaled)
            full((C, H4)),                     # W_fc1 (bf16)
            full((H4, C)),                     # W_fc2 (bf16)
            full((8, H4)),                     # packed f32 biases + LN params
        ],
        out_specs=full((BT, C)),
        scratch_shapes=[pltpu.VMEM((BT, C), jnp.float32)],      # f32 attn-output scratch
        compiler_params=pltpu.CompilerParams(
            dimension_semantics=("arbitrary",)),
        cost_estimate=pl.CostEstimate(
            flops=flops, transcendentals=transcendentals,
            bytes_accessed=bytes_accessed),
    )(x2d, wqkv_s, wfc1_bf, wfc2_bf, vec)

    return out.reshape(B, T, C)


def reference_block(x, params, n_head):
    """Pure-JAX f32 reference mirroring the PyTorch forward pass."""
    (wqkv, bqkv, g1, beta1, wfc1, bfc1, wfc2, bfc2, g2, beta2) = params
    B, T, C = x.shape
    hd = C // n_head

    def ln(z, g, b, eps=1e-5):
        mu = jnp.mean(z, axis=-1, keepdims=True)
        var = jnp.mean((z - mu) ** 2, axis=-1, keepdims=True)
        return (z - mu) / jnp.sqrt(var + eps) * g + b

    qkv = x @ wqkv + bqkv[0]
    q, k, v = jnp.split(qkv, 3, axis=-1)
    q = q.reshape(B, T, n_head, hd).transpose(0, 2, 1, 3)
    k = k.reshape(B, T, n_head, hd).transpose(0, 2, 1, 3)
    v = v.reshape(B, T, n_head, hd).transpose(0, 2, 1, 3)
    attn = jnp.einsum("bhtd,bhsd->bhts", q, k) / math.sqrt(hd)
    attn = jax.nn.softmax(attn, axis=-1)
    y = jnp.einsum("bhts,bhsd->bhtd", attn, v)
    y = y.transpose(0, 2, 1, 3).reshape(B, T, C)

    x1 = ln(x + y, g1[0], beta1[0])
    h1 = x1 @ wfc1 + bfc1[0]
    h1 = 0.5 * h1 * (1.0 + jax.lax.erf(h1 / math.sqrt(2.0)))
    m = h1 @ wfc2 + bfc2[0]
    return ln(x1 + m, g2[0], beta2[0])


if __name__ == "__main__":
    # Small config: n_embd=32, n_head=4, batch=2, seq=8
    B, T, C, n_head = 2, 8, 32, 4

    key = jax.random.PRNGKey(0)
    ks = jax.random.split(key, 8)
    x = jax.random.normal(ks[0], (B, T, C), dtype=jnp.float32)

    # Deterministic synthetic parameters (PyTorch shapes, stored as [in, out]).
    wqkv = jax.random.normal(ks[1], (C, 3 * C), dtype=jnp.float32) * 0.02
    bqkv = jax.random.normal(ks[2], (1, 3 * C), dtype=jnp.float32) * 0.02
    g1 = jnp.ones((1, C), dtype=jnp.float32)
    beta1 = jnp.zeros((1, C), dtype=jnp.float32)
    wfc1 = jax.random.normal(ks[3], (C, 4 * C), dtype=jnp.float32) * 0.02
    bfc1 = jax.random.normal(ks[4], (1, 4 * C), dtype=jnp.float32) * 0.02
    wfc2 = jax.random.normal(ks[5], (4 * C, C), dtype=jnp.float32) * 0.02
    bfc2 = jax.random.normal(ks[6], (1, C), dtype=jnp.float32) * 0.02
    g2 = jnp.ones((1, C), dtype=jnp.float32)
    beta2 = jnp.zeros((1, C), dtype=jnp.float32)

    params = (wqkv, bqkv, g1, beta1, wfc1, bfc1, wfc2, bfc2, g2, beta2)

    # One-time weight prep (hoisted out of the per-call path).
    prepared = jax.tree_util.tree_map(jax.block_until_ready,
                                      prepare_block_params(params, n_head))

    fwd = jax.jit(block_forward, static_argnums=(2,))
    out = jax.block_until_ready(fwd(x, prepared, n_head))

    ref = reference_block(x, params, n_head)
    # bf16 MXU operands + approx EUP reciprocal => slightly looser tolerance vs f32 ref.
    np.testing.assert_allclose(np.asarray(out), np.asarray(ref), rtol=2e-2, atol=2e-2)

    print("KERNEL_OK")
</pallas_src>

<mosaic_0001>
module attributes {stable_mosaic.version = 11 : i64} {
  func.func @block_kernel(%arg0: i32, %arg1: memref<16x32xf32, #tpu.memory_space<vmem>>, %arg2: memref<32x96xbf16, #tpu.memory_space<vmem>>, %arg3: memref<32x128xbf16, #tpu.memory_space<vmem>>, %arg4: memref<128x32xbf16, #tpu.memory_space<vmem>>, %arg5: memref<8x128xf32, #tpu.memory_space<vmem>>, %arg6: memref<16x32xf32, #tpu.memory_space<vmem>>, %arg7: memref<16x32xf32, #tpu.memory_space<vmem>>) attributes {dimension_semantics = [#tpu.dimension_semantics<arbitrary>], iteration_bounds = array<i64: 1>, scalar_prefetch = 0 : i64, scratch_operands = 1 : i64, tpu.core_type = #tpu.core_type<tc>, window_params = [{pipeline_mode = #tpu.pipeline_mode<synchronous>, transform_indices = @transform_0, window_bounds = array<i64: 16, 32>}, {pipeline_mode = #tpu.pipeline_mode<synchronous>, transform_indices = @transform_1, window_bounds = array<i64: 32, 96>}, {pipeline_mode = #tpu.pipeline_mode<synchronous>, transform_indices = @transform_2, window_bounds = array<i64: 32, 128>}, {pipeline_mode = #tpu.pipeline_mode<synchronous>, transform_indices = @transform_3, window_bounds = array<i64: 128, 32>}, {pipeline_mode = #tpu.pipeline_mode<synchronous>, transform_indices = @transform_4, window_bounds = array<i64: 8, 128>}, {pipeline_mode = #tpu.pipeline_mode<synchronous>, transform_indices = @transform_5, window_bounds = array<i64: 16, 32>}]} {
    %c0 = arith.constant 0 : index
    %c0_0 = arith.constant 0 : index
    %0 = vector.load %arg1[%c0, %c0_0] : memref<16x32xf32, #tpu.memory_space<vmem>>, vector<16x32xf32>
    %c0_1 = arith.constant 0 : index
    %c0_2 = arith.constant 0 : index
    %1 = vector.load %arg5[%c0_1, %c0_2] : memref<8x128xf32, #tpu.memory_space<vmem>>, vector<8x128xf32>
    %2 = vector.extract_strided_slice %1 {offsets = [0, 0], sizes = [1, 96], strides = [1, 1]} : vector<8x128xf32> to vector<1x96xf32>
    %3 = vector.extract_strided_slice %1 {offsets = [1, 0], sizes = [1, 128], strides = [1, 1]} : vector<8x128xf32> to vector<1x128xf32>
    %4 = vector.extract_strided_slice %1 {offsets = [2, 0], sizes = [1, 32], strides = [1, 1]} : vector<8x128xf32> to vector<1x32xf32>
    %5 = vector.extract_strided_slice %1 {offsets = [3, 0], sizes = [1, 32], strides = [1, 1]} : vector<8x128xf32> to vector<1x32xf32>
    %6 = vector.extract_strided_slice %1 {offsets = [4, 0], sizes = [1, 32], strides = [1, 1]} : vector<8x128xf32> to vector<1x32xf32>
    %7 = vector.extract_strided_slice %1 {offsets = [5, 0], sizes = [1, 32], strides = [1, 1]} : vector<8x128xf32> to vector<1x32xf32>
    %8 = vector.extract_strided_slice %1 {offsets = [6, 0], sizes = [1, 32], strides = [1, 1]} : vector<8x128xf32> to vector<1x32xf32>
    %9 = arith.truncf %0 : vector<16x32xf32> to vector<16x32xbf16>
    %c0_3 = arith.constant 0 : index
    %c0_4 = arith.constant 0 : index
    %10 = vector.load %arg2[%c0_3, %c0_4] : memref<32x96xbf16, #tpu.memory_space<vmem>>, vector<32x96xbf16>
    %cst = arith.constant dense<0.000000e+00> : vector<16x96xf32>
    %11 = tpu.matmul %9, %10, %cst {dimension_numbers = #tpu.dot_dimension_numbers<[1], [0], [0], [1], [0, 0, 1, 1], [], []>} : vector<16x32xbf16>, vector<32x96xbf16>, vector<16x96xf32> -> vector<16x96xf32>
    %12 = vector.broadcast %2 : vector<1x96xf32> to vector<16x96xf32>
    %13 = arith.addf %11, %12 : vector<16x96xf32>
    %14 = arith.truncf %13 : vector<16x96xf32> to vector<16x96xbf16>
    %15 = vector.extract_strided_slice %14 {offsets = [0, 0], sizes = [8, 8], strides = [1, 1]} : vector<16x96xbf16> to vector<8x8xbf16>
    %16 = vector.extract_strided_slice %14 {offsets = [0, 32], sizes = [8, 8], strides = [1, 1]} : vector<16x96xbf16> to vector<8x8xbf16>
    %17 = vector.extract_strided_slice %14 {offsets = [0, 64], sizes = [8, 8], strides = [1, 1]} : vector<16x96xbf16> to vector<8x8xbf16>
    %cst_5 = arith.constant dense<0.000000e+00> : vector<8x8xf32>
    %18 = tpu.matmul %15, %16, %cst_5 {dimension_numbers = #tpu.dot_dimension_numbers<[1], [1], [0], [0], [0, 0, 1, 0], [], []>} : vector<8x8xbf16>, vector<8x8xbf16>, vector<8x8xf32> -> vector<8x8xf32>
    %cst_6 = arith.constant dense<0xFF800000> : vector<8xf32>
    %19 = vector.multi_reduction <maximumf>, %18, %cst_6 [1] : vector<8x8xf32> to vector<8xf32>
    %20 = vector.shape_cast %19 : vector<8xf32> to vector<8x1xf32>
    %21 = vector.broadcast %20 : vector<8x1xf32> to vector<8x8xf32>
    %22 = arith.subf %18, %21 : vector<8x8xf32>
    %23 = math.exp %22 : vector<8x8xf32>
    %cst_7 = arith.constant dense<0.000000e+00> : vector<8xf32>
    %24 = vector.multi_reduction <add>, %23, %cst_7 [1] : vector<8x8xf32> to vector<8xf32>
    %25 = vector.shape_cast %24 : vector<8xf32> to vector<8x1xf32>
    %26 = tpu.reciprocal %25 {approx = true} : vector<8x1xf32> -> vector<8x1xf32>
    %27 = vector.broadcast %26 : vector<8x1xf32> to vector<8x8xf32>
    %28 = arith.mulf %23, %27 : vector<8x8xf32>
    %29 = arith.truncf %28 : vector<8x8xf32> to vector<8x8xbf16>
    %cst_8 = arith.constant dense<0.000000e+00> : vector<8x8xf32>
    %30 = tpu.matmul %29, %17, %cst_8 {dimension_numbers = #tpu.dot_dimension_numbers<[1], [0], [0], [1], [0, 0, 1, 1], [], []>} : vector<8x8xbf16>, vector<8x8xbf16>, vector<8x8xf32> -> vector<8x8xf32>
    %c0_9 = arith.constant 0 : index
    %c0_10 = arith.constant 0 : index
    %31 = vector.load %arg7[%c0_9, %c0_10] : memref<16x32xf32, #tpu.memory_space<vmem>>, vector<8x8xf32>
    tpu.vector_store %arg7[%c0_9, %c0_10], %30 {strides = array<i32>} : memref<16x32xf32, #tpu.memory_space<vmem>>, vector<8x8xf32>,
    %32 = vector.extract_strided_slice %14 {offsets = [0, 8], sizes = [8, 8], strides = [1, 1]} : vector<16x96xbf16> to vector<8x8xbf16>
    %33 = vector.extract_strided_slice %14 {offsets = [0, 40], sizes = [8, 8], strides = [1, 1]} : vector<16x96xbf16> to vector<8x8xbf16>
    %34 = vector.extract_strided_slice %14 {offsets = [0, 72], sizes = [8, 8], strides = [1, 1]} : vector<16x96xbf16> to vector<8x8xbf16>
    %cst_11 = arith.constant dense<0.000000e+00> : vector<8x8xf32>
    %35 = tpu.matmul %32, %33, %cst_11 {dimension_numbers = #tpu.dot_dimension_numbers<[1], [1], [0], [0], [0, 0, 1, 0], [], []>} : vector<8x8xbf16>, vector<8x8xbf16>, vector<8x8xf32> -> vector<8x8xf32>
    %cst_12 = arith.constant dense<0xFF800000> : vector<8xf32>
    %36 = vector.multi_reduction <maximumf>, %35, %cst_12 [1] : vector<8x8xf32> to vector<8xf32>
    %37 = vector.shape_cast %36 : vector<8xf32> to vector<8x1xf32>
    %38 = vector.broadcast %37 : vector<8x1xf32> to vector<8x8xf32>
    %39 = arith.subf %35, %38 : vector<8x8xf32>
    %40 = math.exp %39 : vector<8x8xf32>
    %cst_13 = arith.constant dense<0.000000e+00> : vector<8xf32>
    %41 = vector.multi_reduction <add>, %40, %cst_13 [1] : vector<8x8xf32> to vector<8xf32>
    %42 = vector.shape_cast %41 : vector<8xf32> to vector<8x1xf32>
    %43 = tpu.reciprocal %42 {approx = true} : vector<8x1xf32> -> vector<8x1xf32>
    %44 = vector.broadcast %43 : vector<8x1xf32> to vector<8x8xf32>
    %45 = arith.mulf %40, %44 : vector<8x8xf32>
    %46 = arith.truncf %45 : vector<8x8xf32> to vector<8x8xbf16>
    %cst_14 = arith.constant dense<0.000000e+00> : vector<8x8xf32>
    %47 = tpu.matmul %46, %34, %cst_14 {dimension_numbers = #tpu.dot_dimension_numbers<[1], [0], [0], [1], [0, 0, 1, 1], [], []>} : vector<8x8xbf16>, vector<8x8xbf16>, vector<8x8xf32> -> vector<8x8xf32>
    %c0_15 = arith.constant 0 : index
    %c8 = arith.constant 8 : index
    %48 = vector.load %arg7[%c0_15, %c8] : memref<16x32xf32, #tpu.memory_space<vmem>>, vector<8x8xf32>
    tpu.vector_store %arg7[%c0_15, %c8], %47 {strides = array<i32>} : memref<16x32xf32, #tpu.memory_space<vmem>>, vector<8x8xf32>,
    %49 = vector.extract_strided_slice %14 {offsets = [0, 16], sizes = [8, 8], strides = [1, 1]} : vector<16x96xbf16> to vector<8x8xbf16>
    %50 = vector.extract_strided_slice %14 {offsets = [0, 48], sizes = [8, 8], strides = [1, 1]} : vector<16x96xbf16> to vector<8x8xbf16>
    %51 = vector.extract_strided_slice %14 {offsets = [0, 80], sizes = [8, 8], strides = [1, 1]} : vector<16x96xbf16> to vector<8x8xbf16>
    %cst_16 = arith.constant dense<0.000000e+00> : vector<8x8xf32>
    %52 = tpu.matmul %49, %50, %cst_16 {dimension_numbers = #tpu.dot_dimension_numbers<[1], [1], [0], [0], [0, 0, 1, 0], [], []>} : vector<8x8xbf16>, vector<8x8xbf16>, vector<8x8xf32> -> vector<8x8xf32>
    %cst_17 = arith.constant dense<0xFF800000> : vector<8xf32>
    %53 = vector.multi_reduction <maximumf>, %52, %cst_17 [1] : vector<8x8xf32> to vector<8xf32>
    %54 = vector.shape_cast %53 : vector<8xf32> to vector<8x1xf32>
    %55 = vector.broadcast %54 : vector<8x1xf32> to vector<8x8xf32>
    %56 = arith.subf %52, %55 : vector<8x8xf32>
    %57 = math.exp %56 : vector<8x8xf32>
    %cst_18 = arith.constant dense<0.000000e+00> : vector<8xf32>
    %58 = vector.multi_reduction <add>, %57, %cst_18 [1] : vector<8x8xf32> to vector<8xf32>
    %59 = vector.shape_cast %58 : vector<8xf32> to vector<8x1xf32>
    %60 = tpu.reciprocal %59 {approx = true} : vector<8x1xf32> -> vector<8x1xf32>
    %61 = vector.broadcast %60 : vector<8x1xf32> to vector<8x8xf32>
    %62 = arith.mulf %57, %61 : vector<8x8xf32>
    %63 = arith.truncf %62 : vector<8x8xf32> to vector<8x8xbf16>
    %cst_19 = arith.constant dense<0.000000e+00> : vector<8x8xf32>
    %64 = tpu.matmul %63, %51, %cst_19 {dimension_numbers = #tpu.dot_dimension_numbers<[1], [0], [0], [1], [0, 0, 1, 1], [], []>} : vector<8x8xbf16>, vector<8x8xbf16>, vector<8x8xf32> -> vector<8x8xf32>
    %c0_20 = arith.constant 0 : index
    %c16 = arith.constant 16 : index
    %65 = vector.load %arg7[%c0_20, %c16] : memref<16x32xf32, #tpu.memory_space<vmem>>, vector<8x8xf32>
    tpu.vector_store %arg7[%c0_20, %c16], %64 {strides = array<i32>} : memref<16x32xf32, #tpu.memory_space<vmem>>, vector<8x8xf32>,
    %66 = vector.extract_strided_slice %14 {offsets = [0, 24], sizes = [8, 8], strides = [1, 1]} : vector<16x96xbf16> to vector<8x8xbf16>
    %67 = vector.extract_strided_slice %14 {offsets = [0, 56], sizes = [8, 8], strides = [1, 1]} : vector<16x96xbf16> to vector<8x8xbf16>
    %68 = vector.extract_strided_slice %14 {offsets = [0, 88], sizes = [8, 8], strides = [1, 1]} : vector<16x96xbf16> to vector<8x8xbf16>
    %cst_21 = arith.constant dense<0.000000e+00> : vector<8x8xf32>
    %69 = tpu.matmul %66, %67, %cst_21 {dimension_numbers = #tpu.dot_dimension_numbers<[1], [1], [0], [0], [0, 0, 1, 0], [], []>} : vector<8x8xbf16>, vector<8x8xbf16>, vector<8x8xf32> -> vector<8x8xf32>
    %cst_22 = arith.constant dense<0xFF800000> : vector<8xf32>
    %70 = vector.multi_reduction <maximumf>, %69, %cst_22 [1] : vector<8x8xf32> to vector<8xf32>
    %71 = vector.shape_cast %70 : vector<8xf32> to vector<8x1xf32>
    %72 = vector.broadcast %71 : vector<8x1xf32> to vector<8x8xf32>
    %73 = arith.subf %69, %72 : vector<8x8xf32>
    %74 = math.exp %73 : vector<8x8xf32>
    %cst_23 = arith.constant dense<0.000000e+00> : vector<8xf32>
    %75 = vector.multi_reduction <add>, %74, %cst_23 [1] : vector<8x8xf32> to vector<8xf32>
    %76 = vector.shape_cast %75 : vector<8xf32> to vector<8x1xf32>
    %77 = tpu.reciprocal %76 {approx = true} : vector<8x1xf32> -> vector<8x1xf32>
    %78 = vector.broadcast %77 : vector<8x1xf32> to vector<8x8xf32>
    %79 = arith.mulf %74, %78 : vector<8x8xf32>
    %80 = arith.truncf %79 : vector<8x8xf32> to vector<8x8xbf16>
    %cst_24 = arith.constant dense<0.000000e+00> : vector<8x8xf32>
    %81 = tpu.matmul %80, %68, %cst_24 {dimension_numbers = #tpu.dot_dimension_numbers<[1], [0], [0], [1], [0, 0, 1, 1], [], []>} : vector<8x8xbf16>, vector<8x8xbf16>, vector<8x8xf32> -> vector<8x8xf32>
    %c0_25 = arith.constant 0 : index
    %c24 = arith.constant 24 : index
    %82 = vector.load %arg7[%c0_25, %c24] : memref<16x32xf32, #tpu.memory_space<vmem>>, vector<8x8xf32>
    tpu.vector_store %arg7[%c0_25, %c24], %81 {strides = array<i32>} : memref<16x32xf32, #tpu.memory_space<vmem>>, vector<8x8xf32>,
    %83 = vector.extract_strided_slice %14 {offsets = [8, 0], sizes = [8, 8], strides = [1, 1]} : vector<16x96xbf16> to vector<8x8xbf16>
    %84 = vector.extract_strided_slice %14 {offsets = [8, 32], sizes = [8, 8], strides = [1, 1]} : vector<16x96xbf16> to vector<8x8xbf16>
    %85 = vector.extract_strided_slice %14 {offsets = [8, 64], sizes = [8, 8], strides = [1, 1]} : vector<16x96xbf16> to vector<8x8xbf16>
    %cst_26 = arith.constant dense<0.000000e+00> : vector<8x8xf32>
    %86 = tpu.matmul %83, %84, %cst_26 {dimension_numbers = #tpu.dot_dimension_numbers<[1], [1], [0], [0], [0, 0, 1, 0], [], []>} : vector<8x8xbf16>, vector<8x8xbf16>, vector<8x8xf32> -> vector<8x8xf32>
    %cst_27 = arith.constant dense<0xFF800000> : vector<8xf32>
    %87 = vector.multi_reduction <maximumf>, %86, %cst_27 [1] : vector<8x8xf32> to vector<8xf32>
    %88 = vector.shape_cast %87 : vector<8xf32> to vector<8x1xf32>
    %89 = vector.broadcast %88 : vector<8x1xf32> to vector<8x8xf32>
    %90 = arith.subf %86, %89 : vector<8x8xf32>
    %91 = math.exp %90 : vector<8x8xf32>
    %cst_28 = arith.constant dense<0.000000e+00> : vector<8xf32>
    %92 = vector.multi_reduction <add>, %91, %cst_28 [1] : vector<8x8xf32> to vector<8xf32>
    %93 = vector.shape_cast %92 : vector<8xf32> to vector<8x1xf32>
    %94 = tpu.reciprocal %93 {approx = true} : vector<8x1xf32> -> vector<8x1xf32>
    %95 = vector.broadcast %94 : vector<8x1xf32> to vector<8x8xf32>
    %96 = arith.mulf %91, %95 : vector<8x8xf32>
    %97 = arith.truncf %96 : vector<8x8xf32> to vector<8x8xbf16>
    %cst_29 = arith.constant dense<0.000000e+00> : vector<8x8xf32>
    %98 = tpu.matmul %97, %85, %cst_29 {dimension_numbers = #tpu.dot_dimension_numbers<[1], [0], [0], [1], [0, 0, 1, 1], [], []>} : vector<8x8xbf16>, vector<8x8xbf16>, vector<8x8xf32> -> vector<8x8xf32>
    %c8_30 = arith.constant 8 : index
    %c0_31 = arith.constant 0 : index
    %99 = vector.load %arg7[%c8_30, %c0_31] : memref<16x32xf32, #tpu.memory_space<vmem>>, vector<8x8xf32>
    tpu.vector_store %arg7[%c8_30, %c0_31], %98 {strides = array<i32>} : memref<16x32xf32, #tpu.memory_space<vmem>>, vector<8x8xf32>,
    %100 = vector.extract_strided_slice %14 {offsets = [8, 8], sizes = [8, 8], strides = [1, 1]} : vector<16x96xbf16> to vector<8x8xbf16>
    %101 = vector.extract_strided_slice %14 {offsets = [8, 40], sizes = [8, 8], strides = [1, 1]} : vector<16x96xbf16> to vector<8x8xbf16>
    %102 = vector.extract_strided_slice %14 {offsets = [8, 72], sizes = [8, 8], strides = [1, 1]} : vector<16x96xbf16> to vector<8x8xbf16>
    %cst_32 = arith.constant dense<0.000000e+00> : vector<8x8xf32>
    %103 = tpu.matmul %100, %101, %cst_32 {dimension_numbers = #tpu.dot_dimension_numbers<[1], [1], [0], [0], [0, 0, 1, 0], [], []>} : vector<8x8xbf16>, vector<8x8xbf16>, vector<8x8xf32> -> vector<8x8xf32>
    %cst_33 = arith.constant dense<0xFF800000> : vector<8xf32>
    %104 = vector.multi_reduction <maximumf>, %103, %cst_33 [1] : vector<8x8xf32> to vector<8xf32>
    %105 = vector.shape_cast %104 : vector<8xf32> to vector<8x1xf32>
    %106 = vector.broadcast %105 : vector<8x1xf32> to vector<8x8xf32>
    %107 = arith.subf %103, %106 : vector<8x8xf32>
    %108 = math.exp %107 : vector<8x8xf32>
    %cst_34 = arith.constant dense<0.000000e+00> : vector<8xf32>
    %109 = vector.multi_reduction <add>, %108, %cst_34 [1] : vector<8x8xf32> to vector<8xf32>
    %110 = vector.shape_cast %109 : vector<8xf32> to vector<8x1xf32>
    %111 = tpu.reciprocal %110 {approx = true} : vector<8x1xf32> -> vector<8x1xf32>
    %112 = vector.broadcast %111 : vector<8x1xf32> to vector<8x8xf32>
    %113 = arith.mulf %108, %112 : vector<8x8xf32>
    %114 = arith.truncf %113 : vector<8x8xf32> to vector<8x8xbf16>
    %cst_35 = arith.constant dense<0.000000e+00> : vector<8x8xf32>
    %115 = tpu.matmul %114, %102, %cst_35 {dimension_numbers = #tpu.dot_dimension_numbers<[1], [0], [0], [1], [0, 0, 1, 1], [], []>} : vector<8x8xbf16>, vector<8x8xbf16>, vector<8x8xf32> -> vector<8x8xf32>
    %c8_36 = arith.constant 8 : index
    %c8_37 = arith.constant 8 : index
    %116 = vector.load %arg7[%c8_36, %c8_37] : memref<16x32xf32, #tpu.memory_space<vmem>>, vector<8x8xf32>
    tpu.vector_store %arg7[%c8_36, %c8_37], %115 {strides = array<i32>} : memref<16x32xf32, #tpu.memory_space<vmem>>, vector<8x8xf32>,
    %117 = vector.extract_strided_slice %14 {offsets = [8, 16], sizes = [8, 8], strides = [1, 1]} : vector<16x96xbf16> to vector<8x8xbf16>
    %118 = vector.extract_strided_slice %14 {offsets = [8, 48], sizes = [8, 8], strides = [1, 1]} : vector<16x96xbf16> to vector<8x8xbf16>
    %119 = vector.extract_strided_slice %14 {offsets = [8, 80], sizes = [8, 8], strides = [1, 1]} : vector<16x96xbf16> to vector<8x8xbf16>
    %cst_38 = arith.constant dense<0.000000e+00> : vector<8x8xf32>
    %120 = tpu.matmul %117, %118, %cst_38 {dimension_numbers = #tpu.dot_dimension_numbers<[1], [1], [0], [0], [0, 0, 1, 0], [], []>} : vector<8x8xbf16>, vector<8x8xbf16>, vector<8x8xf32> -> vector<8x8xf32>
    %cst_39 = arith.constant dense<0xFF800000> : vector<8xf32>
    %121 = vector.multi_reduction <maximumf>, %120, %cst_39 [1] : vector<8x8xf32> to vector<8xf32>
    %122 = vector.shape_cast %121 : vector<8xf32> to vector<8x1xf32>
    %123 = vector.broadcast %122 : vector<8x1xf32> to vector<8x8xf32>
    %124 = arith.subf %120, %123 : vector<8x8xf32>
    %125 = math.exp %124 : vector<8x8xf32>
    %cst_40 = arith.constant dense<0.000000e+00> : vector<8xf32>
    %126 = vector.multi_reduction <add>, %125, %cst_40 [1] : vector<8x8xf32> to vector<8xf32>
    %127 = vector.shape_cast %126 : vector<8xf32> to vector<8x1xf32>
    %128 = tpu.reciprocal %127 {approx = true} : vector<8x1xf32> -> vector<8x1xf32>
    %129 = vector.broadcast %128 : vector<8x1xf32> to vector<8x8xf32>
    %130 = arith.mulf %125, %129 : vector<8x8xf32>
    %131 = arith.truncf %130 : vector<8x8xf32> to vector<8x8xbf16>
    %cst_41 = arith.constant dense<0.000000e+00> : vector<8x8xf32>
    %132 = tpu.matmul %131, %119, %cst_41 {dimension_numbers = #tpu.dot_dimension_numbers<[1], [0], [0], [1], [0, 0, 1, 1], [], []>} : vector<8x8xbf16>, vector<8x8xbf16>, vector<8x8xf32> -> vector<8x8xf32>
    %c8_42 = arith.constant 8 : index
    %c16_43 = arith.constant 16 : index
    %133 = vector.load %arg7[%c8_42, %c16_43] : memref<16x32xf32, #tpu.memory_space<vmem>>, vector<8x8xf32>
    tpu.vector_store %arg7[%c8_42, %c16_43], %132 {strides = array<i32>} : memref<16x32xf32, #tpu.memory_space<vmem>>, vector<8x8xf32>,
    %134 = vector.extract_strided_slice %14 {offsets = [8, 24], sizes = [8, 8], strides = [1, 1]} : vector<16x96xbf16> to vector<8x8xbf16>
    %135 = vector.extract_strided_slice %14 {offsets = [8, 56], sizes = [8, 8], strides = [1, 1]} : vector<16x96xbf16> to vector<8x8xbf16>
    %136 = vector.extract_strided_slice %14 {offsets = [8, 88], sizes = [8, 8], strides = [1, 1]} : vector<16x96xbf16> to vector<8x8xbf16>
    %cst_44 = arith.constant dense<0.000000e+00> : vector<8x8xf32>
    %137 = tpu.matmul %134, %135, %cst_44 {dimension_numbers = #tpu.dot_dimension_numbers<[1], [1], [0], [0], [0, 0, 1, 0], [], []>} : vector<8x8xbf16>, vector<8x8xbf16>, vector<8x8xf32> -> vector<8x8xf32>
    %cst_45 = arith.constant dense<0xFF800000> : vector<8xf32>
    %138 = vector.multi_reduction <maximumf>, %137, %cst_45 [1] : vector<8x8xf32> to vector<8xf32>
    %139 = vector.shape_cast %138 : vector<8xf32> to vector<8x1xf32>
    %140 = vector.broadcast %139 : vector<8x1xf32> to vector<8x8xf32>
    %141 = arith.subf %137, %140 : vector<8x8xf32>
    %142 = math.exp %141 : vector<8x8xf32>
    %cst_46 = arith.constant dense<0.000000e+00> : vector<8xf32>
    %143 = vector.multi_reduction <add>, %142, %cst_46 [1] : vector<8x8xf32> to vector<8xf32>
    %144 = vector.shape_cast %143 : vector<8xf32> to vector<8x1xf32>
    %145 = tpu.reciprocal %144 {approx = true} : vector<8x1xf32> -> vector<8x1xf32>
    %146 = vector.broadcast %145 : vector<8x1xf32> to vector<8x8xf32>
    %147 = arith.mulf %142, %146 : vector<8x8xf32>
    %148 = arith.truncf %147 : vector<8x8xf32> to vector<8x8xbf16>
    %cst_47 = arith.constant dense<0.000000e+00> : vector<8x8xf32>
    %149 = tpu.matmul %148, %136, %cst_47 {dimension_numbers = #tpu.dot_dimension_numbers<[1], [0], [0], [1], [0, 0, 1, 1], [], []>} : vector<8x8xbf16>, vector<8x8xbf16>, vector<8x8xf32> -> vector<8x8xf32>
    %c8_48 = arith.constant 8 : index
    %c24_49 = arith.constant 24 : index
    %150 = vector.load %arg7[%c8_48, %c24_49] : memref<16x32xf32, #tpu.memory_space<vmem>>, vector<8x8xf32>
    tpu.vector_store %arg7[%c8_48, %c24_49], %149 {strides = array<i32>} : memref<16x32xf32, #tpu.memory_space<vmem>>, vector<8x8xf32>,
    %c0_50 = arith.constant 0 : index
    %c0_51 = arith.constant 0 : index
    %151 = vector.load %arg7[%c0_50, %c0_51] : memref<16x32xf32, #tpu.memory_space<vmem>>, vector<16x32xf32>
    %152 = arith.addf %0, %151 : vector<16x32xf32>
    %cst_52 = arith.constant dense<0.000000e+00> : vector<16xf32>
    %153 = vector.multi_reduction <add>, %152, %cst_52 [1] : vector<16x32xf32> to vector<16xf32>
    %154 = vector.shape_cast %153 : vector<16xf32> to vector<16x1xf32>
    %cst_53 = arith.constant 3.200000e+01 : f32
    %155 = vector.broadcast %cst_53 : f32 to vector<16x1xf32>
    %156 = arith.divf %154, %155 : vector<16x1xf32>
    %157 = vector.broadcast %156 : vector<16x1xf32> to vector<16x32xf32>
    %158 = arith.subf %152, %157 : vector<16x32xf32>
    %159 = arith.mulf %158, %158 : vector<16x32xf32>
    %cst_54 = arith.constant dense<0.000000e+00> : vector<16xf32>
    %160 = vector.multi_reduction <add>, %159, %cst_54 [1] : vector<16x32xf32> to vector<16xf32>
    %161 = vector.shape_cast %160 : vector<16xf32> to vector<16x1xf32>
    %cst_55 = arith.constant 3.200000e+01 : f32
    %162 = vector.broadcast %cst_55 : f32 to vector<16x1xf32>
    %163 = arith.divf %161, %162 : vector<16x1xf32>
    %164 = vector.broadcast %156 : vector<16x1xf32> to vector<16x32xf32>
    %165 = arith.subf %152, %164 : vector<16x32xf32>
    %cst_56 = arith.constant 9.99999974E-6 : f32
    %166 = vector.broadcast %cst_56 : f32 to vector<16x1xf32>
    %167 = arith.addf %163, %166 : vector<16x1xf32>
    %168 = math.rsqrt %167 : vector<16x1xf32>
    %169 = vector.broadcast %168 : vector<16x1xf32> to vector<16x32xf32>
    %170 = arith.mulf %165, %169 : vector<16x32xf32>
    %171 = vector.broadcast %5 : vector<1x32xf32> to vector<16x32xf32>
    %172 = arith.mulf %170, %171 : vector<16x32xf32>
    %173 = vector.broadcast %6 : vector<1x32xf32> to vector<16x32xf32>
    %174 = arith.addf %172, %173 : vector<16x32xf32>
    %175 = arith.truncf %174 : vector<16x32xf32> to vector<16x32xbf16>
    %c0_57 = arith.constant 0 : index
    %c0_58 = arith.constant 0 : index
    %176 = vector.load %arg3[%c0_57, %c0_58] : memref<32x128xbf16, #tpu.memory_space<vmem>>, vector<32x128xbf16>
    %cst_59 = arith.constant dense<0.000000e+00> : vector<16x128xf32>
    %177 = tpu.matmul %175, %176, %cst_59 {dimension_numbers = #tpu.dot_dimension_numbers<[1], [0], [0], [1], [0, 0, 1, 1], [], []>} : vector<16x32xbf16>, vector<32x128xbf16>, vector<16x128xf32> -> vector<16x128xf32>
    %178 = vector.broadcast %3 : vector<1x128xf32> to vector<16x128xf32>
    %179 = arith.addf %177, %178 : vector<16x128xf32>
    %cst_60 = arith.constant 5.000000e-01 : f32
    %180 = vector.broadcast %cst_60 : f32 to vector<16x128xf32>
    %181 = arith.mulf %180, %179 : vector<16x128xf32>
    %cst_61 = arith.constant 0.707106769 : f32
    %182 = vector.broadcast %cst_61 : f32 to vector<16x128xf32>
    %183 = arith.mulf %179, %182 : vector<16x128xf32>
    %184 = math.erf %183 : vector<16x128xf32>
    %cst_62 = arith.constant 1.000000e+00 : f32
    %185 = vector.broadcast %cst_62 : f32 to vector<16x128xf32>
    %186 = arith.addf %185, %184 : vector<16x128xf32>
    %187 = arith.mulf %181, %186 : vector<16x128xf32>
    %188 = arith.truncf %187 : vector<16x128xf32> to vector<16x128xbf16>
    %c0_63 = arith.constant 0 : index
    %c0_64 = arith.constant 0 : index
    %189 = vector.load %arg4[%c0_63, %c0_64] : memref<128x32xbf16, #tpu.memory_space<vmem>>, vector<128x32xbf16>
    %cst_65 = arith.constant dense<0.000000e+00> : vector<16x32xf32>
    %190 = tpu.matmul %188, %189, %cst_65 {dimension_numbers = #tpu.dot_dimension_numbers<[1], [0], [0], [1], [0, 0, 1, 1], [], []>} : vector<16x128xbf16>, vector<128x32xbf16>, vector<16x32xf32> -> vector<16x32xf32>
    %191 = vector.broadcast %4 : vector<1x32xf32> to vector<16x32xf32>
    %192 = arith.addf %190, %191 : vector<16x32xf32>
    %193 = arith.addf %174, %192 : vector<16x32xf32>
    %cst_66 = arith.constant dense<0.000000e+00> : vector<16xf32>
    %194 = vector.multi_reduction <add>, %193, %cst_66 [1] : vector<16x32xf32> to vector<16xf32>
    %195 = vector.shape_cast %194 : vector<16xf32> to vector<16x1xf32>
    %cst_67 = arith.constant 3.200000e+01 : f32
    %196 = vector.broadcast %cst_67 : f32 to vector<16x1xf32>
    %197 = arith.divf %195, %196 : vector<16x1xf32>
    %198 = vector.broadcast %197 : vector<16x1xf32> to vector<16x32xf32>
    %199 = arith.subf %193, %198 : vector<16x32xf32>
    %200 = arith.mulf %199, %199 : vector<16x32xf32>
    %cst_68 = arith.constant dense<0.000000e+00> : vector<16xf32>
    %201 = vector.multi_reduction <add>, %200, %cst_68 [1] : vector<16x32xf32> to vector<16xf32>
    %202 = vector.shape_cast %201 : vector<16xf32> to vector<16x1xf32>
    %cst_69 = arith.constant 3.200000e+01 : f32
    %203 = vector.broadcast %cst_69 : f32 to vector<16x1xf32>
    %204 = arith.divf %202, %203 : vector<16x1xf32>
    %205 = vector.broadcast %197 : vector<16x1xf32> to vector<16x32xf32>
    %206 = arith.subf %193, %205 : vector<16x32xf32>
    %cst_70 = arith.constant 9.99999974E-6 : f32
    %207 = vector.broadcast %cst_70 : f32 to vector<16x1xf32>
    %208 = arith.addf %204, %207 : vector<16x1xf32>
    %209 = math.rsqrt %208 : vector<16x1xf32>
    %210 = vector.broadcast %209 : vector<16x1xf32> to vector<16x32xf32>
    %211 = arith.mulf %206, %210 : vector<16x32xf32>
    %212 = vector.broadcast %7 : vector<1x32xf32> to vector<16x32xf32>
    %213 = arith.mulf %211, %212 : vector<16x32xf32>
    %214 = vector.broadcast %8 : vector<1x32xf32> to vector<16x32xf32>
    %215 = arith.addf %213, %214 : vector<16x32xf32>
    %c0_71 = arith.constant 0 : index
    %c0_72 = arith.constant 0 : index
    %216 = vector.load %arg6[%c0_71, %c0_72] : memref<16x32xf32, #tpu.memory_space<vmem>>, vector<16x32xf32>
    tpu.vector_store %arg6[%c0_71, %c0_72], %215 {strides = array<i32>} : memref<16x32xf32, #tpu.memory_space<vmem>>, vector<16x32xf32>,
    return
  }
  func.func @transform_0(%arg0: i32) -> (i32, i32) {
    %c0_i32 = arith.constant 0 : i32
    %c0_i32_0 = arith.constant 0 : i32
    %c0_i32_1 = arith.constant 0 : i32
    return %c0_i32, %c0_i32_0 : i32, i32
  }
  func.func @transform_1(%arg0: i32) -> (i32, i32) {
    %c0_i32 = arith.constant 0 : i32
    %c0_i32_0 = arith.constant 0 : i32
    %c0_i32_1 = arith.constant 0 : i32
    return %c0_i32, %c0_i32_0 : i32, i32
  }
  func.func @transform_2(%arg0: i32) -> (i32, i32) {
    %c0_i32 = arith.constant 0 : i32
    %c0_i32_0 = arith.constant 0 : i32
    %c0_i32_1 = arith.constant 0 : i32
    return %c0_i32, %c0_i32_0 : i32, i32
  }
  func.func @transform_3(%arg0: i32) -> (i32, i32) {
    %c0_i32 = arith.constant 0 : i32
    %c0_i32_0 = arith.constant 0 : i32
    %c0_i32_1 = arith.constant 0 : i32
    return %c0_i32, %c0_i32_0 : i32, i32
  }
  func.func @transform_4(%arg0: i32) -> (i32, i32) {
    %c0_i32 = arith.constant 0 : i32
    %c0_i32_0 = arith.constant 0 : i32
    %c0_i32_1 = arith.constant 0 : i32
    return %c0_i32, %c0_i32_0 : i32, i32
  }
  func.func @transform_5(%arg0: i32) -> (i32, i32) {
    %c0_i32 = arith.constant 0 : i32
    %c0_i32_0 = arith.constant 0 : i32
    %c0_i32_1 = arith.constant 0 : i32
    return %c0_i32, %c0_i32_0 : i32, i32
  }
}

</mosaic_0001>

<bundles_post_ra>
// kernel: block_forward.1
= control target key start
LH: loop header
LB: loop body
LE: loop exit
PB: predicated region body
PF: predicated region fallthrough
CT: control target
= control target key end

     0   :  { %v1598_v1 = vmov 0.0   ;;  %vm1599_vm0 = vmmov 0   ;;  %vm46_vm1 = vcmask 261120   ;;  %s1908_s0 = inlined_call_operand.vmem [shape: f32[16,32], index: 0, kind: input, shape index: {}]   ;;  %s1909_s1 = inlined_call_operand.vmem [shape: bf16[32,96], index: 1, kind: input, shape index: {}]   ;;  %s1910_s2 = inlined_call_operand.vmem [shape: bf16[32,128], index: 2, kind: input, shape index: {}]   ;;  %s1911_s3 = inlined_call_operand.vmem [shape: bf16[128,32], index: 3, kind: input, shape index: {}]   ;;  %s1912_s4 = inlined_call_operand.vmem [shape: f32[8,128], index: 4, kind: input, shape index: {}]   ;;  %s1913_s5 = inlined_call_operand.hbm [shape: f32[16,32], index: 5, kind: output, shape index: {}]  }
   0x1   :  { %v1520_v0 = vld [vmem:[%s1909_s1 + $0x8] sm:$0xff]   ;;  %1370 = vmatprep.subr.bf16.mxu1 %v1598_v1  ;;  %1396 = vmatprep.subr.bf16.mxu0 %v1598_v1  ;;  %v1521_v2 = vld [vmem:[%s1909_s1] sm:$0xff]  }
   0x2   :  { %1371 = vmatpush3.bf16.msra.mxu1 %v1520_v0  ;;  %1374 = vmatprep.mubr.msk.bf16.mxu1 %vm1599_vm0, %v1598_v1  ;;  %v1659_v3 = vld [vmem:[%s1908_s0] sm:$0xff]  ;;  %v1664_v4 = vld [vmem:[%s1908_s0 + $0x8] sm:$0xff] }
   0x3   :  { %1372 = vmatprep.subr.bf16.mxu1 %v1598_v1  ;;  %1398 = vmatprep.mubr.msk.bf16.mxu0 %vm1599_vm0, %v1598_v1  ;;  %v25_v5 = vpack.c.bf16 %v1664_v4, %v1659_v3 }
   0x6   :  { %1373 = vmatpush3.bf16.msra.mxu1 %v1521_v2 }
   0x7   :  { %1378 = vmatprep.subr.bf16.mxu1 %v1598_v1 }
   0x9   :  { %1375 = vmatmul.mubr.msk.bf16.vlgmr.msra.gmra.mxu1 %vm46_vm1, %v25_v5 }
   0xa   :  { %1380 = vmatprep.mubr.msk.bf16.mxu1 %vm1599_vm0, %v1598_v1 }
   0xb   :  { %10 = vsyncpa [#allocation4], 0  ;;  %v30_v6 = vlaneseq  ;;  %v1681_v9 = vld [vmem:[%s1912_s4] sm:$0xff]  ;;  %s1600_s26 = smov 64   ;;  %s1601_s27 = smov 96   ;;  %vm95_vm2 = vcmask 64512  }
   0xc   :  { %s1602_s4 = smov 88   ;;  %vm159_vm3 = vcmask 1043456   ;;  %s1603_s28 = smov 72   ;;  %vm318_vm4 = vcmask 130112   ;;  %vm434_vm5 = vcmask 195712   ;;  %vm550_vm6 = vcmask 261312  }
   0xd   :  { %v1675_v7 = vshrl.u32 %v30_v6, 7  ;;  %s1604_s29 = smov 112   ;;  %s1605_s30 = smov 104  }
   0xe   :  { %s1606_s6 = smov 120   ;;  %s1607_s7 = smov 80  }
   0xf   :  { %v32_v8 = vsub.s32 0, %v1675_v7  ;;  %s1608_s8 = smov 56   ;;  %s1609_s9 = smov 48  }
  0x10   :  { %s1610_s10 = smov 40   ;;  %s1611_s11 = smov 8  }
  0x11   :  { %v33_v11 = vrot.slane %v1681_v9, %v32_v8  ;;  %s1612_s12 = smov 16   ;;  %s1613_s13 = smov 24  }
  0xc9   :  { %v84_v10 = vpop.f32.mrf.mxu1 }
  0xca   :  { %v85_v14 = vadd.f32 %v84_v10, %v33_v11 }
  0xcb   :  { %v1376_v12 = vpop.f32.mrf.mxu1 }
  0xcd   :  { %v87_v13 = vpop.f32.mrf.mxu1 }
  0xce   :  { %v88_v15 = vadd.f32 %v87_v13, %v33_v11 }
  0xcf   :  { %v1377_v16 = vpop.f32.mrf.mxu1 }
  0xd0   :  { %v1684_v17 = vpack.c.bf16 %v88_v15, %v85_v14 }
  0xd2   :  { %154 = vrot.lane.b32.xlu1 %v1684_v17, %s1600_s26  ;;  %93 = vrot.lane.b32.xlu0 %v1684_v17, %s1601_s27  ;;  %v1703_v27 = vrot.slane %v1684_v17, 4 }
  0xd6   :  { %206 = vrot.lane.b32.xlu1 %v1684_v17, %s1602_s4 }
 0x144   :  { %v94_v18 = vpop.permute.xlu0 %93  ;;  %v155_v20 = vpop.permute.xlu1 %154 }
 0x145   :  { %v100_v19 = vsel %vm95_vm2, %v94_v18, 0  ;;  %v161_v21 = vsel %vm159_vm3, %v155_v20, 0 }
 0x146   :  { %1379 = vmatpush3.bf16.xpose.msra.mxu1 %v100_v19 }
 0x147   :  { %1384 = vmatprep.subr.bf16.mxu1 %v1598_v1 }
 0x148   :  { %v207_v33 = vpop.permute.xlu1 %206 }
 0x149   :  { %v212_v39 = vsel %vm95_vm2, %v207_v33, 0 }
 0x14d   :  { %1381 = vmatmul.mubr.msk.bf16.vlgmr.msra.gmra.mxu1 %vm95_vm2, %v1684_v17 }
 0x14e   :  { %1385 = vmatpush3.bf16.msra.mxu1 %v161_v21  ;;  %1386 = vmatprep.mubr.msk.bf16.mxu1 %vm1599_vm0, %v1598_v1 }
 0x14f   :  { %1390 = vmatprep.subr.bf16.mxu1 %v1598_v1 }
 0x20d   :  { %v136_v22 = vpop.f32.mrf.mxu1 }
 0x20e   :  { %v142_v23 = vsel %vm95_vm2, %v136_v22, -inf }
 0x20f   :  { %143 = vmax.xlane.f32.xlu0 %v142_v23  ;;  %v1382_v24 = vpop.f32.mrf.mxu1 }
 0x211   :  { %v139_v25 = vpop.f32.mrf.mxu1 }
 0x213   :  { %v1383_v26 = vpop.f32.mrf.mxu1 }
 0x225   :  { %438 = vrot.lane.b32.xlu0 %v1684_v17, %s1603_s28 }
 0x229   :  { %777 = vrot.lane.b32.xlu0 %v1703_v27, %s1604_s29 }
 0x22d   :  { %892 = vrot.lane.b32.xlu0 %v1703_v27, %s1605_s30 }
 0x298   :  { %v144_v28 = vpop.xlane.xlu0 %143 }
 0x299   :  { %v145_v29 = vsub.f32 %v136_v22, %v144_v28 }
 0x29b   :  { %v146_v30 = vmul.f32 1.442695, %v145_v29 }
 0x29c   :  { %v439_v43 = vpop.permute.xlu0 %438 }
 0x29d   :  { %1532 = vpow2.f32 %v146_v30  ;;  %v444_v45 = vsel %vm95_vm2, %v439_v43, 0 }
 0x2a0   :  { %v778_v54 = vpop.permute.xlu0 %777 }
 0x2a4   :  { %v893_v56 = vpop.permute.xlu0 %892 }
 0x2aa   :  { %v1533_v31 = vpop.eup %1532 }
 0x2ab   :  { %v148_v32 = vsel %vm95_vm2, %v1533_v31, 0.0 }
 0x2ac   :  { %149 = vadd.xlane.f32.xlu1 %v148_v32 }
 0x2bd   :  { %204 = vrot.lane.b32.xlu1 %v1684_v17, %s1606_s6 }
 0x2c1   :  { %322 = vrot.lane.b32.xlu1 %v1684_v17, %s1607_s7 }
 0x2c5   :  { %320 = vrot.lane.b32.xlu1 %v1684_v17, %s1604_s29 }
 0x2c9   :  { %436 = vrot.lane.b32.xlu1 %v1684_v17, %s1605_s30 }
 0x2cd   :  { %553 = vrot.lane.b32.xlu1 %v1703_v27, %s1601_s27 }
 0x2d1   :  { %664 = vrot.lane.b32.xlu1 %v1703_v27, %s1602_s4 }
 0x2d5   :  { %662 = vrot.lane.b32.xlu1 %v1703_v27, %s1606_s6 }
 0x2d9   :  { %779 = vrot.lane.b32.xlu1 %v1703_v27, %s1607_s7 }
 0x2dd   :  { %894 = vrot.lane.b32.xlu1 %v1703_v27, %s1603_s28 }
 0x335   :  { %v150_v34 = vpop.xlane.xlu1 %149 }
 0x336   :  { %1534 = vrcp.f32 %v150_v34 }
 0x339   :  { %v205_v36 = vpop.permute.xlu1 %204 }
 0x33d   :  { %v323_v40 = vpop.permute.xlu1 %322 }
 0x33e   :  { %v328_v42 = vsel %vm95_vm2, %v323_v40, 0 }
 0x341   :  { %v321_v41 = vpop.permute.xlu1 %320 }
 0x343   :  { %v1535_v35 = vpop.eup %1534 }
 0x344   :  { %v152_v37 = vmul.f32 %v1535_v35, %v1533_v31 }
 0x345   :  { %v437_v44 = vpop.permute.xlu1 %436 }
 0x346   :  { %v153_v38 = vpack.c.bf16 %v152_v37, %v152_v37 }
 0x348   :  { %1387 = vmatmul.mubr.msk.bf16.vlgmr.msra.gmra.mxu1 %vm95_vm2, %v153_v38 }
 0x349   :  { %1391 = vmatpush3.bf16.xpose.msra.mxu1 %v212_v39  ;;  %1392 = vmatprep.mubr.msk.bf16.mxu1 %vm1599_vm0, %v1598_v1  ;;  %v554_v46 = vpop.permute.xlu1 %553 }
 0x34a   :  { %1402 = vmatprep.subr.bf16.mxu1 %v1598_v1  ;;  %v559_v47 = vsel %vm95_vm2, %v554_v46, 0 }
 0x34d   :  { %v665_v48 = vpop.permute.xlu1 %664 }
 0x34e   :  { %v670_v50 = vsel %vm95_vm2, %v665_v48, 0 }
 0x350   :  { %1393 = vmatmul.mubr.msk.bf16.vlgmr.msra.gmra.mxu1 %vm95_vm2, %v205_v36 }
 0x351   :  { %1403 = vmatpush3.bf16.xpose.msra.mxu1 %v328_v42  ;;  %1404 = vmatprep.mubr.msk.bf16.mxu1 %vm1599_vm0, %v1598_v1  ;;  %v663_v49 = vpop.permute.xlu1 %662 }
 0x352   :  { %1414 = vmatprep.subr.bf16.mxu1 %v1598_v1 }
 0x355   :  { %v780_v51 = vpop.permute.xlu1 %779 }
 0x356   :  { %v785_v52 = vsel %vm95_vm2, %v780_v51, 0 }
 0x358   :  { %1405 = vmatmul.mubr.msk.bf16.vlgmr.msra.gmra.mxu1 %vm95_vm2, %v321_v41 }
 0x359   :  { %1415 = vmatpush3.bf16.xpose.msra.mxu1 %v444_v45  ;;  %1416 = vmatprep.mubr.msk.bf16.mxu1 %vm1599_vm0, %v1598_v1  ;;  %v895_v53 = vpop.permute.xlu1 %894 }
 0x35a   :  { %1426 = vmatprep.subr.bf16.mxu1 %v1598_v1  ;;  %v900_v55 = vsel %vm95_vm2, %v895_v53, 0 }
 0x360   :  { %1417 = vmatmul.mubr.msk.bf16.vlgmr.msra.gmra.mxu1 %vm95_vm2, %v437_v44 }
 0x361   :  { %1427 = vmatpush3.bf16.xpose.msra.mxu1 %v559_v47  ;;  %1428 = vmatprep.mubr.msk.bf16.mxu1 %vm1599_vm0, %v1598_v1 }
 0x362   :  { %1438 = vmatprep.subr.bf16.mxu1 %v1598_v1 }
 0x368   :  { %1429 = vmatmul.mubr.msk.bf16.vlgmr.msra.gmra.mxu1 %vm95_vm2, %v1703_v27 }
 0x369   :  { %1439 = vmatpush3.bf16.xpose.msra.mxu1 %v670_v50  ;;  %1440 = vmatprep.mubr.msk.bf16.mxu1 %vm1599_vm0, %v1598_v1 }
 0x36a   :  { %1450 = vmatprep.subr.bf16.mxu1 %v1598_v1 }
 0x370   :  { %1441 = vmatmul.mubr.msk.bf16.vlgmr.msra.gmra.mxu1 %vm95_vm2, %v663_v49 }
 0x371   :  { %1451 = vmatpush3.bf16.xpose.msra.mxu1 %v785_v52  ;;  %1452 = vmatprep.mubr.msk.bf16.mxu1 %vm1599_vm0, %v1598_v1 }
 0x372   :  { %1462 = vmatprep.subr.bf16.mxu1 %v1598_v1 }
 0x378   :  { %1453 = vmatmul.mubr.msk.bf16.vlgmr.msra.gmra.mxu1 %vm95_vm2, %v778_v54 }
 0x379   :  { %1463 = vmatpush3.bf16.xpose.msra.mxu1 %v900_v55  ;;  %1464 = vmatprep.mubr.msk.bf16.mxu1 %vm1599_vm0, %v1598_v1 }
 0x37a   :  { %1474 = vmatprep.subr.bf16.mxu1 %v1598_v1 }
 0x380   :  { %1465 = vmatmul.mubr.msk.bf16.vlgmr.msra.gmra.mxu1 %vm95_vm2, %v893_v56 }
 0x381   :  { %1478 = vmatprep.mubr.msk.bf16.mxu1 %vm1599_vm0, %v1598_v1 }
 0x408   :  { %v197_v57 = vpop.f32.mrf.mxu1 }
 0x409   :  { %203 = vst.msk [vmem:[#allocation2] sm:$0xff] %vm95_vm2, %v197_v57 }
 0x40a   :  { %v1388_v58 = vpop.f32.mrf.mxu1 }
 0x40c   :  { %v200_v59 = vpop.f32.mrf.mxu1 }
 0x40e   :  { %v1389_v60 = vpop.f32.mrf.mxu1 }
 0x410   :  { %v248_v61 = vpop.f32.mrf.mxu1 }
 0x411   :  { %v254_v62 = vsel %vm95_vm2, %v248_v61, -inf }
 0x412   :  { %255 = vmax.xlane.f32.xlu1 %v254_v62  ;;  %v1394_v63 = vpop.f32.mrf.mxu1 }
 0x414   :  { %v251_v0 = vpop.f32.mrf.mxu1 }
 0x416   :  { %v1395_v2 = vpop.f32.mrf.mxu1 }
 0x418   :  { %v364_v5 = vpop.f32.mrf.mxu1 }
 0x419   :  { %v370_v6 = vsel %vm95_vm2, %v364_v5, -inf }
 0x41a   :  { %371 = vmax.xlane.f32.xlu0 %v370_v6  ;;  %v1406_v8 = vpop.f32.mrf.mxu1 }
 0x41c   :  { %v367_v10 = vpop.f32.mrf.mxu1 }
 0x41e   :  { %v1407_v11 = vpop.f32.mrf.mxu1 }
 0x420   :  { %v480_v12 = vpop.f32.mrf.mxu1 }
 0x421   :  { %v486_v13 = vsel %vm95_vm2, %v480_v12, -inf }
 0x422   :  { %487 = vmax.xlane.f32.xlu0 %v486_v13  ;;  %v1418_v14 = vpop.f32.mrf.mxu1 }
 0x424   :  { %v483_v15 = vpop.f32.mrf.mxu1 }
 0x426   :  { %v1419_v16 = vpop.f32.mrf.mxu1 }
 0x428   :  { %v595_v18 = vpop.f32.mrf.mxu1 }
 0x429   :  { %v601_v19 = vsel %vm95_vm2, %v595_v18, -inf }
 0x42a   :  { %602 = vmax.xlane.f32.xlu1 %v601_v19  ;;  %v1430_v20 = vpop.f32.mrf.mxu1 }
 0x42c   :  { %v598_v21 = vpop.f32.mrf.mxu1 }
 0x42e   :  { %v1431_v22 = vpop.f32.mrf.mxu1 }
 0x430   :  { %v706_v23 = vpop.f32.mrf.mxu1 }
 0x431   :  { %v712_v24 = vsel %vm95_vm2, %v706_v23, -inf }
 0x432   :  { %713 = vmax.xlane.f32.xlu0 %v712_v24  ;;  %v1442_v25 = vpop.f32.mrf.mxu1 }
 0x434   :  { %v709_v26 = vpop.f32.mrf.mxu1 }
 0x436   :  { %v1443_v28 = vpop.f32.mrf.mxu1 }
 0x438   :  { %v821_v29 = vpop.f32.mrf.mxu1 }
 0x439   :  { %v827_v30 = vsel %vm95_vm2, %v821_v29, -inf }
 0x43a   :  { %828 = vmax.xlane.f32.xlu1 %v827_v30  ;;  %v1454_v31 = vpop.f32.mrf.mxu1 }
 0x43c   :  { %v824_v32 = vpop.f32.mrf.mxu1 }
 0x43e   :  { %v1455_v33 = vpop.f32.mrf.mxu1 }
 0x440   :  { %v936_v34 = vpop.f32.mrf.mxu1 }
 0x441   :  { %v942_v35 = vsel %vm95_vm2, %v936_v34, -inf }
 0x442   :  { %943 = vmax.xlane.f32.xlu0 %v942_v35  ;;  %v1466_v36 = vpop.f32.mrf.mxu1 }
 0x444   :  { %v939_v37 = vpop.f32.mrf.mxu1 }
 0x446   :  { %v1467_v38 = vpop.f32.mrf.mxu1 }
 0x44b   :  { %266 = vrot.lane.b32.xlu1 %v1684_v17, %s1608_s8 }
 0x458   :  { %382 = vrot.lane.b32.xlu0 %v1684_v17, %s1609_s9 }
 0x49b   :  { %v256_v39 = vpop.xlane.xlu1 %255 }
 0x49c   :  { %v257_v40 = vsub.f32 %v248_v61, %v256_v39 }
 0x49e   :  { %v258_v41 = vmul.f32 1.442695, %v257_v40 }
 0x4a0   :  { %1536 = vpow2.f32 %v258_v41 }
 0x4a3   :  { %v372_v42 = vpop.xlane.xlu0 %371 }
 0x4a4   :  { %v373_v43 = vsub.f32 %v364_v5, %v372_v42 }
 0x4a6   :  { %v374_v44 = vmul.f32 1.442695, %v373_v43 }
 0x4a8   :  { %1538 = vpow2.f32 %v374_v44 }
 0x4ab   :  { %v488_v45 = vpop.xlane.xlu0 %487 }
 0x4ac   :  { %v489_v46 = vsub.f32 %v480_v12, %v488_v45 }
 0x4ad   :  { %v1537_v47 = vpop.eup %1536 }
 0x4ae   :  { %v490_v48 = vmul.f32 1.442695, %v489_v46  ;;  %v260_v49 = vsel %vm95_vm2, %v1537_v47, 0.0 }
 0x4af   :  { %261 = vadd.xlane.f32.xlu1 %v260_v49 }
 0x4b0   :  { %1540 = vpow2.f32 %v490_v48 }
 0x4b3   :  { %v603_v54 = vpop.xlane.xlu1 %602 }
 0x4b4   :  { %v604_v58 = vsub.f32 %v595_v18, %v603_v54 }
 0x4b5   :  { %v1539_v50 = vpop.eup %1538 }
 0x4b6   :  { %v376_v51 = vsel %vm95_vm2, %v1539_v50, 0.0  ;;  %v605_v60 = vmul.f32 1.442695, %v604_v58 }
 0x4b7   :  { %377 = vadd.xlane.f32.xlu0 %v376_v51 }
 0x4b8   :  { %1542 = vpow2.f32 %v605_v60 }
 0x4bb   :  { %v714_v59 = vpop.xlane.xlu0 %713 }
 0x4bc   :  { %v715_v61 = vsub.f32 %v706_v23, %v714_v59 }
 0x4bd   :  { %v1772_v52 = vpop.eup %1540 }
 0x4be   :  { %v492_v53 = vsel %vm95_vm2, %v1772_v52, 0.0  ;;  %v716_v0 = vmul.f32 1.442695, %v715_v61 }
 0x4bf   :  { %493 = vadd.xlane.f32.xlu1 %v492_v53 }
 0x4c0   :  { %1544 = vpow2.f32 %v716_v0 }
 0x4c3   :  { %v829_v55 = vpop.xlane.xlu1 %828 }
 0x4c4   :  { %v830_v63 = vsub.f32 %v821_v29, %v829_v55 }
 0x4c5   :  { %v1543_v8 = vpop.eup %1542 }
 0x4c6   :  { %v831_v5 = vmul.f32 1.442695, %v830_v63 }
 0x4c7   :  { %v267_v56 = vpop.permute.xlu1 %266 }
 0x4c8   :  { %v272_v57 = vsel %vm159_vm3, %v267_v56, 0  ;;  %1546 = vpow2.f32 %v831_v5 }
 0x4c9   :  { %1397 = vmatpush3.bf16.msra.mxu0 %v272_v57 }
 0x4ca   :  { %1408 = vmatprep.subr.bf16.mxu0 %v1598_v1 }
 0x4cb   :  { %v944_v62 = vpop.xlane.xlu0 %943 }
 0x4cc   :  { %v945_v2 = vsub.f32 %v936_v34, %v944_v62 }
 0x4cd   :  { %498 = vrot.lane.b32.xlu0 %v1684_v17, %s1610_s10  ;;  %v607_v17 = vsel %vm95_vm2, %v1543_v8, 0.0  ;;  %v1783_v10 = vpop.eup %1544 }
 0x4ce   :  { %v946_v6 = vmul.f32 1.442695, %v945_v2  ;;  %v718_v12 = vsel %vm95_vm2, %v1783_v10, 0.0 }
 0x4cf   :  { %v383_v18 = vpop.permute.xlu0 %382 }
 0x4d0   :  { %613 = vrot.lane.b32.xlu1 %v1703_v27, %s1600_s26  ;;  %1548 = vpow2.f32 %v946_v6  ;;  %v388_v24 = vsel %vm159_vm3, %v383_v18, 0 }
 0x4d5   :  { %v1785_v11 = vpop.eup %1546 }
 0x4d6   :  { %v833_v14 = vsel %vm95_vm2, %v1785_v11, 0.0 }
 0x4dd   :  { %v1789_v13 = vpop.eup %1548 }
 0x4de   :  { %v948_v15 = vsel %vm95_vm2, %v1789_v13, 0.0 }
 0x4ec   :  { %608 = vadd.xlane.f32.xlu0 %v607_v17 }
 0x4f0   :  { %719 = vadd.xlane.f32.xlu0 %v718_v12 }
 0x4f4   :  { %834 = vadd.xlane.f32.xlu1 %v833_v14  ;;  %949 = vadd.xlane.f32.xlu0 %v948_v15 }
 0x505   :  { %839 = vrot.lane.b32.xlu1 %v1703_v27, %s1609_s9 }
 0x509   :  { %954 = vrot.lane.b32.xlu1 %v1703_v27, %s1610_s10 }
 0x50a   :  { %724 = vrot.lane.b32.xlu0 %v1703_v27, %s1608_s8 }
 0x538   :  { %v262_v16 = vpop.xlane.xlu1 %261 }
 0x539   :  { %1550 = vrcp.f32 %v262_v16 }
 0x540   :  { %v378_v19 = vpop.xlane.xlu0 %377 }
 0x541   :  { %1552 = vrcp.f32 %v378_v19 }
 0x544   :  { %v499_v26 = vpop.permute.xlu0 %498 }
 0x545   :  { %v504_v29 = vsel %vm159_vm3, %v499_v26, 0 }
 0x546   :  { %v1551_v20 = vpop.eup %1550 }
 0x547   :  { %v264_v21 = vmul.f32 %v1551_v20, %v1537_v47 }
 0x548   :  { %v494_v22 = vpop.xlane.xlu1 %493 }
 0x549   :  { %1554 = vrcp.f32 %v494_v22  ;;  %v265_v23 = vpack.c.bf16 %v264_v21, %v264_v21 }
 0x54b   :  { %1399 = vmatmul.mubr.msk.bf16.vlgmr.msra.gmra.mxu0 %vm95_vm2, %v265_v23 }
 0x54c   :  { %1409 = vmatpush3.bf16.msra.mxu0 %v388_v24  ;;  %1410 = vmatprep.mubr.msk.bf16.mxu0 %vm1599_vm0, %v1598_v1  ;;  %v614_v32 = vpop.permute.xlu1 %613 }
 0x54d   :  { %1420 = vmatprep.subr.bf16.mxu0 %v1598_v1  ;;  %v619_v34 = vsel %vm159_vm3, %v614_v32, 0 }
 0x54e   :  { %v1553_v27 = vpop.eup %1552 }
 0x54f   :  { %v380_v25 = vmul.f32 %v1553_v27, %v1539_v50 }
 0x551   :  { %v381_v28 = vpack.c.bf16 %v380_v25, %v380_v25 }
 0x553   :  { %1411 = vmatmul.mubr.msk.bf16.vlgmr.msra.gmra.mxu0 %vm95_vm2, %v381_v28 }
 0x554   :  { %1421 = vmatpush3.bf16.msra.mxu0 %v504_v29  ;;  %1422 = vmatprep.mubr.msk.bf16.mxu0 %vm1599_vm0, %v1598_v1 }
 0x555   :  { %1432 = vmatprep.subr.bf16.mxu0 %v1598_v1 }
 0x556   :  { %v1555_v30 = vpop.eup %1554 }
 0x557   :  { %v496_v31 = vmul.f32 %v1555_v30, %v1772_v52 }
 0x559   :  { %v497_v33 = vpack.c.bf16 %v496_v31, %v496_v31 }
 0x55b   :  { %1423 = vmatmul.mubr.msk.bf16.vlgmr.msra.gmra.mxu0 %vm95_vm2, %v497_v33 }
 0x55c   :  { %1433 = vmatpush3.bf16.msra.mxu0 %v619_v34  ;;  %1434 = vmatprep.mubr.msk.bf16.mxu0 %vm1599_vm0, %v1598_v1 }
 0x55d   :  { %1444 = vmatprep.subr.bf16.mxu0 %v1598_v1 }
 0x575   :  { %v609_v35 = vpop.xlane.xlu0 %608 }
 0x576   :  { %1556 = vrcp.f32 %v609_v35 }
 0x579   :  { %v720_v36 = vpop.xlane.xlu0 %719 }
 0x57a   :  { %1558 = vrcp.f32 %v720_v36 }
 0x57d   :  { %v835_v37 = vpop.xlane.xlu1 %834  ;;  %v950_v38 = vpop.xlane.xlu0 %949 }
 0x57e   :  { %1560 = vrcp.f32 %v835_v37 }
 0x57f   :  { %1562 = vrcp.f32 %v950_v38 }
 0x581   :  { %v725_v41 = vpop.permute.xlu0 %724  ;;  %v840_v46 = vpop.permute.xlu1 %839 }
 0x582   :  { %v730_v44 = vsel %vm159_vm3, %v725_v41, 0  ;;  %v845_v49 = vsel %vm159_vm3, %v840_v46, 0 }
 0x583   :  { %v1557_v39 = vpop.eup %1556 }
 0x584   :  { %v611_v40 = vmul.f32 %v1557_v39, %v1543_v8 }
 0x585   :  { %v955_v51 = vpop.permute.xlu1 %954 }
 0x586   :  { %v612_v42 = vpack.c.bf16 %v611_v40, %v611_v40  ;;  %v960_v54 = vsel %vm159_vm3, %v955_v51, 0 }
 0x587   :  { %v1559_v43 = vpop.eup %1558 }
 0x588   :  { %1435 = vmatmul.mubr.msk.bf16.vlgmr.msra.gmra.mxu0 %vm95_vm2, %v612_v42  ;;  %v722_v45 = vmul.f32 %v1559_v43, %v1783_v10 }
 0x589   :  { %1445 = vmatpush3.bf16.msra.mxu0 %v730_v44  ;;  %1446 = vmatprep.mubr.msk.bf16.mxu0 %vm1599_vm0, %v1598_v1 }
 0x58a   :  { %1456 = vmatprep.subr.bf16.mxu0 %v1598_v1  ;;  %v723_v47 = vpack.c.bf16 %v722_v45, %v722_v45 }
 0x58b   :  { %v1561_v48 = vpop.eup %1560 }
 0x58c   :  { %v837_v50 = vmul.f32 %v1561_v48, %v1785_v11  ;;  %v1563_v53 = vpop.eup %1562  ;;  %v1524_v48 = vld [vmem:[%s1911_s3 + $0x38] sm:$0xff]  }
 0x58d   :  { %v952_v55 = vmul.f32 %v1563_v53, %v1789_v13 }
 0x58e   :  { %v838_v52 = vpack.c.bf16 %v837_v50, %v837_v50 }
 0x58f   :  { %v953_v56 = vpack.c.bf16 %v952_v55, %v952_v55  ;;  %v1040_v55 = vsub.s32 3, %v1675_v7 }
 0x590   :  { %1447 = vmatmul.mubr.msk.bf16.vlgmr.msra.gmra.mxu0 %vm95_vm2, %v723_v47  ;;  %v1523_v47 = vld [vmem:[%s1910_s2] sm:$0xff]  }
 0x591   :  { %1457 = vmatpush3.bf16.msra.mxu0 %v845_v49  ;;  %1458 = vmatprep.mubr.msk.bf16.mxu0 %vm1599_vm0, %v1598_v1 }
 0x592   :  { %1468 = vmatprep.subr.bf16.mxu0 %v1598_v1 }
 0x598   :  { %1459 = vmatmul.mubr.msk.bf16.vlgmr.msra.gmra.mxu0 %vm95_vm2, %v838_v52 }
 0x599   :  { %1469 = vmatpush3.bf16.msra.mxu0 %v960_v54  ;;  %1470 = vmatprep.mubr.msk.bf16.mxu0 %vm1599_vm0, %v1598_v1 }
 0x59a   :  { %1482 = vmatprep.subr.bf16.mxu0 %v1598_v1 }
 0x5a0   :  { %1471 = vmatmul.mubr.msk.bf16.vlgmr.msra.gmra.mxu0 %vm95_vm2, %v953_v56 }
 0x5a1   :  { %1498 = vmatprep.mubr.msk.bf16.mxu0 %vm1599_vm0, %v1598_v1  ;;  %1483 = vmatpush3.bf16.msra.mxu0 %v1524_v48 }
 0x5a2   :  { %1484 = vmatprep.subr.bf16.mxu0 %v1598_v1 }
 0x60b   :  { %v308_v57 = vpop.f32.mrf.mxu0 }
 0x60c   :  { %315 = vrot.lane.b32.xlu1 %v308_v57, %s1611_s11 }
 0x60d   :  { %v1400_v58 = vpop.f32.mrf.mxu0 }
 0x60e   :  { %v1041_v58 = vrot.slane %v1681_v9, %v1040_v55 }
 0x60f   :  { %v311_v59 = vpop.f32.mrf.mxu0 }
 0x610   :  { %v1046_v59 = vsub.s32 4, %v1675_v7 }
 0x611   :  { %v1401_v60 = vpop.f32.mrf.mxu0 }
 0x613   :  { %v424_v61 = vpop.f32.mrf.mxu0 }
 0x614   :  { %431 = vrot.lane.b32.xlu0 %v424_v61, %s1612_s12 }
 0x615   :  { %v1412_v62 = vpop.f32.mrf.mxu0 }
 0x617   :  { %v427_v63 = vpop.f32.mrf.mxu0 }
 0x618   :  { %v1047_v63 = vrot.slane %v1681_v9, %v1046_v59 }
 0x619   :  { %v1413_v0 = vpop.f32.mrf.mxu0 }
 0x61b   :  { %v540_v2 = vpop.f32.mrf.mxu0 }
 0x61c   :  { %547 = vrot.lane.b32.xlu0 %v540_v2, %s1613_s13 }
 0x61d   :  { %v1424_v5 = vpop.f32.mrf.mxu0 }
 0x61f   :  { %v543_v6 = vpop.f32.mrf.mxu0 }
 0x621   :  { %v1425_v8 = vpop.f32.mrf.mxu0 }
 0x622   :  { %v1525_v8 = vld [vmem:[%s1911_s3 + $0x30] sm:$0xff]  }
 0x623   :  { %1485 = vmatpush3.bf16.msra.mxu0 %v1525_v8 }
 0x624   :  { %1486 = vmatprep.subr.bf16.mxu0 %v1598_v1 }
 0x648   :  { %v655_v17 = vpop.f32.mrf.mxu0 }
 0x649   :  { %661 = vst.msk [vmem:[#allocation2 + $0x8] sm:$0xff] %vm95_vm2, %v655_v17  ;;  %v1526_v17 = vld [vmem:[%s1911_s3 + $0x28] sm:$0xff]  }
 0x64a   :  { %v1436_v10 = vpop.f32.mrf.mxu0  ;;  %1487 = vmatpush3.bf16.msra.mxu0 %v1526_v17 }
 0x64b   :  { %1488 = vmatprep.subr.bf16.mxu0 %v1598_v1  ;;  %v1527_v10 = vld [vmem:[%s1911_s3 + $0x20] sm:$0xff]  }
 0x64c   :  { %v658_v11 = vpop.f32.mrf.mxu0 }
 0x64d   :  { %v1528_v11 = vld [vmem:[%s1911_s3 + $0x18] sm:$0xff]  }
 0x64e   :  { %v1437_v12 = vpop.f32.mrf.mxu0  ;;  %1489 = vmatpush3.bf16.msra.mxu0 %v1527_v10 }
 0x64f   :  { %1490 = vmatprep.subr.bf16.mxu0 %v1598_v1  ;;  %v1529_v12 = vld [vmem:[%s1911_s3 + $0x10] sm:$0xff]  }
 0x650   :  { %v766_v13 = vpop.f32.mrf.mxu0 }
 0x651   :  { %773 = vrot.lane.b32.xlu1 %v766_v13, %s1611_s11  ;;  %v1530_v13 = vld [vmem:[%s1911_s3 + $0x8] sm:$0xff]  }
 0x652   :  { %v1448_v14 = vpop.f32.mrf.mxu0  ;;  %1491 = vmatpush3.bf16.msra.mxu0 %v1528_v11 }
 0x653   :  { %1492 = vmatprep.subr.bf16.mxu0 %v1598_v1  ;;  %v1531_v14 = vld [vmem:[%s1911_s3] sm:$0xff]   ;;  %s1614_s3 = smov [#allocation3]  }
 0x654   :  { %v769_v15 = vpop.f32.mrf.mxu0  ;;  %s1282_s30 = sshll.u32 %s1614_s3, 4  ;;  %s1283_s30 = int_to_ptr.vmem [resolvable:$true] %s1282_s30 }
 0x655   :  { %v1057_v15 = vsub.s32 1, %v1675_v7  ;;  %s1576_s6 = scalar_lea.vmem %s1283_s30, 256  ;;  %p1581_p1 = scmp.lt.s32.totalorder %s1283_s30, %s1283_s30 }
 0x656   :  { %v1449_v16 = vpop.f32.mrf.mxu0  ;;  %1493 = vmatpush3.bf16.msra.mxu0 %v1529_v12  ;;  %p1577_p0 = scmp.ne.s32.totalorder %s1283_s30, %s1576_s6  ;;  %p1582_p2 = scmp.lt.s32.totalorder %s1576_s6, %s1576_s6 }
 0x657   :  { %1494 = vmatprep.subr.bf16.mxu0 %v1598_v1  ;;  %v1058_v16 = vrot.slane %v1681_v9, %v1057_v15 }
 0x658   :  { %v881_v18 = vpop.f32.mrf.mxu0  ;;  %p1583_p3 = por %p1582_p2, %p1581_p1 }
 0x659   :  { %888 = vrot.lane.b32.xlu1 %v881_v18, %s1612_s12 }
 0x65a   :  { %v1460_v19 = vpop.f32.mrf.mxu0  ;;  %1495 = vmatpush3.bf16.msra.mxu0 %v1530_v13  ;;  %p1584_p4 = pnand %p1583_p3, %p1577_p0 }
 0x65b   :  { %1496 = vmatprep.subr.bf16.mxu0 %v1598_v1 }
 0x65c   :  { %v884_v20 = vpop.f32.mrf.mxu0 }
 0x65e   :  { %v1461_v21 = vpop.f32.mrf.mxu0  ;;  %1497 = vmatpush3.bf16.msra.mxu0 %v1531_v14 }
 0x660   :  { %v996_v22 = vpop.f32.mrf.mxu0 }
 0x661   :  { %1003 = vrot.lane.b32.xlu1 %v996_v22, %s1613_s13 }
 0x662   :  { %v1472_v23 = vpop.f32.mrf.mxu0 }
 0x664   :  { %v999_v24 = vpop.f32.mrf.mxu0 }
 0x666   :  { %v1473_v27 = vpop.f32.mrf.mxu0 }
 0x67e   :  { %v316_v25 = vpop.permute.xlu1 %315 }
 0x67f   :  { %319 = vst.msk [vmem:[#allocation2] sm:$0xff] %vm318_vm4, %v316_v25 }
 0x686   :  { %v432_v26 = vpop.permute.xlu0 %431 }
 0x687   :  { %435 = vst.msk [vmem:[#allocation2] sm:$0xff] %vm434_vm5, %v432_v26 }
 0x68e   :  { %v548_v28 = vpop.permute.xlu0 %547 }
 0x68f   :  { %551 = vst.msk [vmem:[#allocation2] sm:$0xff] %vm550_vm6, %v548_v28 }
 0x696   :  { %v1007_v29 = vld [vmem:[#allocation2] sm:$0xff] }
 0x697   :  { %v1009_v30 = vadd.f32 %v1007_v29, %v1659_v3 }
 0x699   :  { %v1011_v31 = vsel %vm46_vm1, %v1009_v30, 0.0 }
 0x69a   :  { %1012 = vadd.xlane.f32.xlu0 %v1011_v31 }
 0x6c3   :  { %v774_v32 = vpop.permute.xlu1 %773 }
 0x6c4   :  { %776 = vst.msk [vmem:[#allocation2 + $0x8] sm:$0xff] %vm318_vm4, %v774_v32 }
 0x6cb   :  { %v889_v33 = vpop.permute.xlu1 %888 }
 0x6cc   :  { %891 = vst.msk [vmem:[#allocation2 + $0x8] sm:$0xff] %vm434_vm5, %v889_v33 }
 0x6d3   :  { %v1004_v34 = vpop.permute.xlu1 %1003 }
 0x6d4   :  { %1006 = vst.msk [vmem:[#allocation2 + $0x8] sm:$0xff] %vm550_vm6, %v1004_v34  ;;  %v1144_v34 = vsub.s32 2, %v1675_v7 }
 0x6db   :  { %v1008_v35 = vld [vmem:[#allocation2 + $0x8] sm:$0xff] }
 0x6dc   :  { %v1010_v36 = vadd.f32 %v1008_v35, %v1664_v4  ;;  %v1522_v4 = vld [vmem:[%s1910_s2 + $0x8] sm:$0xff]   ;;  %v1145_v35 = vrot.slane %v1681_v9, %v1144_v34 }
 0x6dd   :  { %1475 = vmatpush3.bf16.msra.mxu1 %v1522_v4 }
 0x6de   :  { %v1014_v37 = vsel %vm46_vm1, %v1010_v36, 0.0  ;;  %1476 = vmatprep.subr.bf16.mxu1 %v1598_v1 }
 0x6df   :  { %1015 = vadd.xlane.f32.xlu1 %v1014_v37 }
 0x6e1   :  { %1477 = vmatpush3.bf16.msra.mxu1 %v1523_v47 }
 0x723   :  { %v1013_v38 = vpop.xlane.xlu0 %1012 }
 0x724   :  { %v1018_v39 = vmul.f32 0.03125, %v1013_v38 }
 0x726   :  { %v1020_v40 = vsub.f32 %v1009_v30, %v1018_v39 }
 0x728   :  { %v1022_v41 = vmul.f32 %v1020_v40, %v1020_v40 }
 0x72a   :  { %v1024_v3 = vsel %vm46_vm1, %v1022_v41, 0.0 }
 0x72b   :  { %1025 = vadd.xlane.f32.xlu0 %v1024_v3 }
 0x768   :  { %v1016_v42 = vpop.xlane.xlu1 %1015 }
 0x769   :  { %v1019_v43 = vmul.f32 0.03125, %v1016_v42 }
 0x76b   :  { %v1021_v44 = vsub.f32 %v1010_v36, %v1019_v43 }
 0x76d   :  { %v1023_v45 = vmul.f32 %v1021_v44, %v1021_v44 }
 0x76f   :  { %v1027_v46 = vsel %vm46_vm1, %v1023_v45, 0.0 }
 0x770   :  { %1028 = vadd.xlane.f32.xlu0 %v1027_v46 }
 0x7b4   :  { %v1026_v49 = vpop.xlane.xlu0 %1025 }
 0x7b5   :  { %v1030_v50 = vmul.f32 0.03125, %v1026_v49 }
 0x7b7   :  { %v1032_v51 = vadd.f32 1e-05, %v1030_v50 }
 0x7b9   :  { %1564 = vrsqrt.f32 %v1032_v51 }
 0x7c6   :  { %v1565_v56 = vpop.eup %1564 }
 0x7c7   :  { %v1036_v57 = vmul.f32 %v1565_v56, %v1020_v40 }
 0x7c9   :  { %v1042_v62 = vmul.f32 %v1041_v58, %v1036_v57 }
 0x7cb   :  { %v1048_v2 = vadd.f32 %v1047_v63, %v1042_v62 }
 0x7f9   :  { %v1029_v52 = vpop.xlane.xlu0 %1028 }
 0x7fa   :  { %v1031_v53 = vmul.f32 0.03125, %v1029_v52 }
 0x7fc   :  { %v1033_v54 = vadd.f32 1e-05, %v1031_v53 }
 0x7fe   :  { %1566 = vrsqrt.f32 %v1033_v54 }
 0x80b   :  { %v1567_v60 = vpop.eup %1566 }
 0x80c   :  { %v1037_v61 = vmul.f32 %v1567_v60, %v1021_v44  ;;  %v1265_v60 = vsub.s32 5, %v1675_v7 }
 0x80e   :  { %v1043_v0 = vmul.f32 %v1041_v58, %v1037_v61  ;;  %v1271_v61 = vsub.s32 6, %v1675_v7  ;;  %v1266_v62 = vrot.slane %v1681_v9, %v1265_v60 }
 0x810   :  { %v1049_v5 = vadd.f32 %v1047_v63, %v1043_v0 }
 0x812   :  { %v1050_v6 = vpack.c.bf16 %v1049_v5, %v1048_v2 }
 0x814   :  { %1479 = vmatmul.mubr.msk.bf16.vlgmr.msra.gmra.mxu1 %vm46_vm1, %v1050_v6 }
 0x8d4   :  { %v1108_v18 = vpop.f32.mrf.mxu1 }
 0x8d5   :  { %v1109_v19 = vadd.f32 %v1108_v18, %v1058_v16 }
 0x8d6   :  { %v1480_v20 = vpop.f32.mrf.mxu1 }
 0x8d7   :  { %v1117_v21 = vmul.f32 0.70710677, %v1109_v19  ;;  %v1115_v28 = vmul.f32 0.5, %v1109_v19 }
 0x8d8   :  { %v1111_v22 = vpop.f32.mrf.mxu1 }
 0x8d9   :  { %1568 = verf.f32 %v1117_v21  ;;  %v1112_v23 = vadd.f32 %v1111_v22, %v1058_v16 }
 0x8da   :  { %v1481_v24 = vpop.f32.mrf.mxu1 }
 0x8db   :  { %v1118_v27 = vmul.f32 0.70710677, %v1112_v23  ;;  %v1116_v29 = vmul.f32 0.5, %v1112_v23 }
 0x8dd   :  { %1570 = verf.f32 %v1118_v27 }
 0x8e6   :  { %v1569_v1 = vpop.eup %1568 }
 0x8e7   :  { %v1121_v25 = vadd.f32 1.0, %v1569_v1 }
 0x8e9   :  { %v1123_v31 = vmul.f32 %v1121_v25, %v1115_v28 }
 0x8ea   :  { %v1571_v26 = vpop.eup %1570 }
 0x8eb   :  { %v1122_v30 = vadd.f32 1.0, %v1571_v26 }
 0x8ed   :  { %v1124_v32 = vmul.f32 %v1122_v30, %v1116_v29 }
 0x8ef   :  { %v1125_v33 = vpack.c.bf16 %v1124_v32, %v1123_v31 }
 0x8f1   :  { %1499 = vmatmul.mubr.bf16.vlgmr.msra.gmra.mxu0 %v1125_v33 }
 0x9b1   :  { %v1228_v36 = vpop.f32.mrf.mxu0 }
 0x9b2   :  { %v1229_v37 = vadd.f32 %v1228_v36, %v1145_v35 }
 0x9b3   :  { %v1500_v38 = vpop.f32.mrf.mxu0 }
 0x9b4   :  { %v1235_v39 = vadd.f32 %v1229_v37, %v1048_v2  ;;  %v1272_v2 = vrot.slane %v1681_v9, %v1271_v61 }
 0x9b5   :  { %v1231_v40 = vpop.f32.mrf.mxu0 }
 0x9b6   :  { %v1232_v41 = vadd.f32 %v1231_v40, %v1145_v35  ;;  %v1237_v3 = vsel %vm46_vm1, %v1235_v39, 0.0 }
 0x9b7   :  { %1238 = vadd.xlane.f32.xlu1 %v1237_v3  ;;  %v1501_v42 = vpop.f32.mrf.mxu0 }
 0x9b8   :  { %v1236_v43 = vadd.f32 %v1232_v41, %v1049_v5 }
 0x9ba   :  { %v1240_v44 = vsel %vm46_vm1, %v1236_v43, 0.0 }
 0x9bb   :  { %1241 = vadd.xlane.f32.xlu0 %v1240_v44 }
 0xa40   :  { %v1239_v45 = vpop.xlane.xlu1 %1238 }
 0xa41   :  { %v1243_v46 = vmul.f32 0.03125, %v1239_v45 }
 0xa43   :  { %v1245_v4 = vsub.f32 %v1235_v39, %v1243_v46 }
 0xa44   :  { %v1242_v47 = vpop.xlane.xlu0 %1241 }
 0xa45   :  { %v1244_v48 = vmul.f32 0.03125, %v1242_v47  ;;  %v1247_v49 = vmul.f32 %v1245_v4, %v1245_v4 }
 0xa47   :  { %v1246_v50 = vsub.f32 %v1236_v43, %v1244_v48  ;;  %v1249_v51 = vsel %vm46_vm1, %v1247_v49, 0.0 }
 0xa48   :  { %1250 = vadd.xlane.f32.xlu1 %v1249_v51 }
 0xa49   :  { %v1248_v52 = vmul.f32 %v1246_v50, %v1246_v50 }
 0xa4b   :  { %v1252_v53 = vsel %vm46_vm1, %v1248_v52, 0.0 }
 0xa4c   :  { %1253 = vadd.xlane.f32.xlu0 %v1252_v53 }
 0xad1   :  { %v1251_v54 = vpop.xlane.xlu1 %1250 }
 0xad2   :  { %v1255_v55 = vmul.f32 0.03125, %v1251_v54 }
 0xad4   :  { %v1257_v56 = vadd.f32 1e-05, %v1255_v55 }
 0xad5   :  { %v1254_v57 = vpop.xlane.xlu0 %1253 }
 0xad6   :  { %1572 = vrsqrt.f32 %v1257_v56  ;;  %v1256_v58 = vmul.f32 0.03125, %v1254_v57 }
 0xad8   :  { %v1258_v59 = vadd.f32 1e-05, %v1256_v58 }
 0xada   :  { %1574 = vrsqrt.f32 %v1258_v59 }
 0xae3   :  { %v1573_v63 = vpop.eup %1572 }
 0xae4   :  { %v1261_v0 = vmul.f32 %v1573_v63, %v1245_v4 }
 0xae6   :  { %v1267_v5 = vmul.f32 %v1266_v62, %v1261_v0 }
 0xae7   :  { %v1575_v6 = vpop.eup %1574 }
 0xae8   :  { %v1262_v8 = vmul.f32 %v1575_v6, %v1246_v50  ;;  %v1273_v17 = vadd.f32 %v1272_v2, %v1267_v5 }
 0xaea   :  { %v1268_v10 = vmul.f32 %v1266_v62, %v1262_v8  ;;  %1275 = vst.msk [vmem:[#allocation3] sm:$0xff] %vm46_vm1, %v1273_v17 }
 0xaec   :  { %v1274_v11 = vadd.f32 %v1272_v2, %v1268_v10 }
 0xaee   :  { %1276 = vst.msk [vmem:[#allocation3 + $0x8] sm:$0xff] %vm46_vm1, %v1274_v11 }
 0xaef   :  { %1587 = shalt.err (!%p1584_p4)
}
 0xaf0   :  { %s1615_s7 = smov 128  }
 0xaf1   :  { %1288 = dma.vmem_to_hbm [thread:$0]  %s1283_s30, 256, %s1913_s5, [#allocation4], %s1615_s7, %s1615_s7, %s1611_s11  }
 0xaf2   :  { %1596 = dma.done.wait [#allocation4], 256  }
 0xaf3   :  { %1597 = vsyncadd [#allocation4], 4294967040 }
 0xaf4   :  { %1292 = vsyncpa [#allocation4], 1 }

</bundles_post_ra>
